<compile_context>
chip_gen: v7x
topology: tpu7x:2x2x1
jax: 0.10.0
libtpu: 0.0.40
codegen_flags: <defaults>
</compile_context>

<pallas_src>
import functools

import jax
import jax.numpy as jnp
from jax import lax
from jax.experimental import pallas as pl
from jax.experimental.pallas import tpu as pltpu


def _lstm_chunk_kernel(*refs, t_chunk, hidden, with_init):
    """One grid step == `t_chunk` timesteps. h/c carried in VMEM scratch.

    Inputs (already prepared by the wrapper):
      gates_x : (t_chunk, B, 4H) f32, time-major, = x @ W_ih^T + (b_ih + b_hh),
                gate columns permuted to (i, f, o, g).
      whh_t   : (H, 4H) f32, W_hh^T with the same column permutation.
    """
    if with_init:
        h0_ref, c0_ref, gx_ref, whh_ref, y_ref, h_scr, c_scr = refs
    else:
        gx_ref, whh_ref, y_ref, h_scr, c_scr = refs

    H = hidden

    @pl.when(pl.program_id(0) == 0)
    def _():
        if with_init:
            h_scr[...] = h0_ref[...].astype(jnp.float32)
            c_scr[...] = c0_ref[...].astype(jnp.float32)
        else:
            h_scr[...] = jnp.zeros_like(h_scr)
            c_scr[...] = jnp.zeros_like(c_scr)

    whh = whh_ref[...]            # (H, 4H), resident across the chunk
    h_in = h_scr[...]
    c_in = c_scr[...]

    def step(s, carry):
        h, c = carry
        # Recurrent term only; x-projection + bias were hoisted to the wrapper.
        gates = gx_ref[s] + jnp.dot(h, whh, preferred_element_type=jnp.float32)
        sig = jax.nn.sigmoid(gates[:, :3 * H])   # contiguous (B, 3H): i | f | o
        g_g = jnp.tanh(gates[:, 3 * H:])         # (B, H)
        i_g = sig[:, 0 * H:1 * H]
        f_g = sig[:, 1 * H:2 * H]
        o_g = sig[:, 2 * H:3 * H]
        c_new = f_g * c + i_g * g_g
        h_new = o_g * jnp.tanh(c_new)
        y_ref[s] = h_new.astype(y_ref.dtype)
        return h_new, c_new

    h_out, c_out = lax.fori_loop(0, t_chunk, step, (h_in, c_in), unroll=True)
    h_scr[...] = h_out
    c_scr[...] = c_out


def _permute_gates(w):
    """PyTorch gate order (i, f, g, o) -> (i, f, o, g) along the 4H axis."""
    wi, wf, wg, wo = jnp.split(w, 4, axis=0)
    return jnp.concatenate([wi, wf, wo, wg], axis=0)


def lstm_forward(x, w_ih, w_hh, b_ih, b_hh, h0=None, c0=None, *, t_chunk=32):
    """x: (B, T, D) batch_first. Returns y: (B, T, H) (get_hidden=False path)."""
    B, T, D = x.shape
    H4 = w_ih.shape[0]
    H = H4 // 4

    # Permute gate columns once, at trace time (free).
    w_ih_p = _permute_gates(w_ih)                     # (4H, D)
    w_hh_p = _permute_gates(w_hh)                     # (4H, H)
    bias_p = _permute_gates(b_ih + b_hh)              # (4H,)

    # Hoist the input projection + bias out of the recurrence: one batched
    # matmul over all timesteps, emitted time-major for cheap leading-dim
    # indexing inside the kernel (no separate transpose of x).
    gates_x = jnp.einsum('btd,gd->tbg',
                         x.astype(jnp.float32),
                         w_ih_p.astype(jnp.float32)) + bias_p   # (T, B, 4H) f32

    # Chunk the time axis: grid step = t_chunk timesteps (pad T at the end;
    # padded steps only produce extra outputs that are sliced off).
    tc = max(1, min(t_chunk, T))
    num_chunks = pl.cdiv(T, tc)
    T_pad = num_chunks * tc
    if T_pad != T:
        gates_x = jnp.pad(gates_x, ((0, T_pad - T), (0, 0), (0, 0)))

    whh_t = jnp.transpose(w_hh_p, (1, 0)).astype(jnp.float32)   # (H, 4H)

    with_init = (h0 is not None) and (c0 is not None)

    in_specs = []
    args = []
    if with_init:
        h0 = jnp.asarray(h0, dtype=jnp.float32).reshape(B, H)
        c0 = jnp.asarray(c0, dtype=jnp.float32).reshape(B, H)
        in_specs += [pl.BlockSpec((B, H), lambda i: (0, 0)),
                     pl.BlockSpec((B, H), lambda i: (0, 0))]
        args += [h0, c0]

    in_specs += [
        pl.BlockSpec((tc, B, 4 * H), lambda i: (i, 0, 0)),   # gates_x chunk
        pl.BlockSpec((H, 4 * H), lambda i: (0, 0)),          # W_hh^T (resident)
    ]
    args += [gates_x, whh_t]

    kernel = functools.partial(_lstm_chunk_kernel,
                               t_chunk=tc, hidden=H, with_init=with_init)

    grid_spec = pltpu.PrefetchScalarGridSpec(
        num_scalar_prefetch=0,
        grid=(num_chunks,),
        in_specs=in_specs,
        out_specs=pl.BlockSpec((tc, B, H), lambda i: (i, 0, 0)),
        scratch_shapes=[
            pltpu.VMEM((B, H), jnp.float32),   # h carry
            pltpu.VMEM((B, H), jnp.float32),   # c carry
        ],
    )

    y_tm = pl.pallas_call(
        kernel,
        out_shape=jax.ShapeDtypeStruct((T_pad, B, H), x.dtype),
        grid_spec=grid_spec,
        compiler_params=pltpu.CompilerParams(
            dimension_semantics=("arbitrary",)),   # recurrence is sequential
    )(*args)

    # TODO(synk): batch-first output directly from the kernel (dynamic sublane
    # stores) would remove this final (B,T,H)-sized transpose; kept in XLA for
    # lowering robustness. For large H on v7x, cast weights to bf16 and set
    # vmem_limit_bytes.
    return jnp.transpose(y_tm[:T], (1, 0, 2))      # (B, T, H)


def _lstm_reference(x, w_ih, w_hh, b_ih, b_hh, h0=None, c0=None):
    """Pure-JAX reference (PyTorch nn.LSTM semantics, single layer, fwd only)."""
    B, T, D = x.shape
    H = w_hh.shape[1]
    bias = b_ih + b_hh
    if h0 is None:
        h0 = jnp.zeros((B, H), x.dtype)
    if c0 is None:
        c0 = jnp.zeros((B, H), x.dtype)

    def step(carry, x_t):
        h, c = carry
        gates = x_t @ w_ih.T + h @ w_hh.T + bias
        i, f, g, o = jnp.split(gates, 4, axis=-1)
        i = jax.nn.sigmoid(i); f = jax.nn.sigmoid(f)
        g = jnp.tanh(g); o = jax.nn.sigmoid(o)
        c = f * c + i * g
        h = o * jnp.tanh(c)
        return (h, c), h

    (_, _), ys = jax.lax.scan(step, (h0.reshape(B, H), c0.reshape(B, H)),
                              jnp.transpose(x, (1, 0, 2)))
    return jnp.transpose(ys, (1, 0, 2))


if __name__ == "__main__":
    # Module config: input_size=16, hidden_size=32, num_layers=1,
    # batch_first=True, bidirectional=False, bias=True, get_hidden=False.
    B, T, D, H = 2, 8, 16, 32
    key = jax.random.PRNGKey(0)
    kx, k1, k2, k3, k4, kh, kc, kx2 = jax.random.split(key, 8)

    bound = 1.0 / jnp.sqrt(jnp.float32(H))
    x = jax.random.normal(kx, (B, T, D), dtype=jnp.float32)
    w_ih = jax.random.uniform(k1, (4 * H, D), jnp.float32, -bound, bound)
    w_hh = jax.random.uniform(k2, (4 * H, H), jnp.float32, -bound, bound)
    b_ih = jax.random.uniform(k3, (4 * H,), jnp.float32, -bound, bound)
    b_hh = jax.random.uniform(k4, (4 * H,), jnp.float32, -bound, bound)

    # 1) Default zero initial state.
    y = jax.block_until_ready(lstm_forward(x, w_ih, w_hh, b_ih, b_hh))
    y_ref = _lstm_reference(x, w_ih, w_hh, b_ih, b_hh)
    assert y.shape == (B, T, H)
    assert jnp.allclose(y, y_ref, atol=1e-5, rtol=1e-5), "mismatch (zero init)"

    # 2) Caller-supplied h0/c0 (exercises the with_init kernel variant).
    h0 = jax.random.normal(kh, (B, H), dtype=jnp.float32)
    c0 = jax.random.normal(kc, (B, H), dtype=jnp.float32)
    y2 = jax.block_until_ready(lstm_forward(x, w_ih, w_hh, b_ih, b_hh, h0, c0))
    y2_ref = _lstm_reference(x, w_ih, w_hh, b_ih, b_hh, h0, c0)
    assert jnp.allclose(y2, y2_ref, atol=1e-5, rtol=1e-5), "mismatch (h0/c0)"

    # 3) Multi-chunk + time padding path (T not a multiple of t_chunk).
    T2 = 10
    x2 = jax.random.normal(kx2, (B, T2, D), dtype=jnp.float32)
    y3 = jax.block_until_ready(
        lstm_forward(x2, w_ih, w_hh, b_ih, b_hh, t_chunk=4))
    y3_ref = _lstm_reference(x2, w_ih, w_hh, b_ih, b_hh)
    assert y3.shape == (B, T2, H)
    assert jnp.allclose(y3, y3_ref, atol=1e-5, rtol=1e-5), "mismatch (chunked)"

    # TODO(synk): dropout (0.0 by default), multi-layer and bidirectional
    # variants, and the get_hidden=True (ht, ct) return path are not implemented.
    print("KERNEL_OK")
</pallas_src>

<mosaic_0001>
module attributes {stable_mosaic.version = 11 : i64} {
  func.func @_lstm_chunk_kernel(%arg0: i32, %arg1: memref<8x2x128xf32, #tpu.memory_space<vmem>>, %arg2: memref<32x128xf32, #tpu.memory_space<vmem>>, %arg3: memref<8x2x32xf32, #tpu.memory_space<vmem>>, %arg4: memref<2x32xf32, #tpu.memory_space<vmem>>, %arg5: memref<2x32xf32, #tpu.memory_space<vmem>>) attributes {dimension_semantics = [#tpu.dimension_semantics<arbitrary>], iteration_bounds = array<i64: 1>, scalar_prefetch = 0 : i64, scratch_operands = 2 : i64, tpu.core_type = #tpu.core_type<tc>, window_params = [{transform_indices = @transform_0, window_bounds = array<i64: 8, 2, 128>}, {pipeline_mode = #tpu.pipeline_mode<synchronous>, transform_indices = @transform_1, window_bounds = array<i64: 32, 128>}, {transform_indices = @transform_2, window_bounds = array<i64: 8, 2, 32>}]} {
    %c0_i32 = arith.constant 0 : i32
    %0 = arith.cmpi eq, %arg0, %c0_i32 : i32
    %1 = arith.extui %0 : i1 to i32
    %c0_i32_0 = arith.constant 0 : i32
    %2 = arith.cmpi ne, %1, %c0_i32_0 : i32
    scf.if %2 {
      %cst_58 = arith.constant 0.000000e+00 : f32
      %208 = vector.broadcast %cst_58 : f32 to vector<2x32xf32>
      %c0_59 = arith.constant 0 : index
      %c0_60 = arith.constant 0 : index
      %209 = vector.load %arg4[%c0_59, %c0_60] : memref<2x32xf32, #tpu.memory_space<vmem>>, vector<2x32xf32>
      tpu.vector_store %arg4[%c0_59, %c0_60], %208 {strides = array<i32>} : memref<2x32xf32, #tpu.memory_space<vmem>>, vector<2x32xf32>,
      %cst_61 = arith.constant 0.000000e+00 : f32
      %210 = vector.broadcast %cst_61 : f32 to vector<2x32xf32>
      %c0_62 = arith.constant 0 : index
      %c0_63 = arith.constant 0 : index
      %211 = vector.load %arg5[%c0_62, %c0_63] : memref<2x32xf32, #tpu.memory_space<vmem>>, vector<2x32xf32>
      tpu.vector_store %arg5[%c0_62, %c0_63], %210 {strides = array<i32>} : memref<2x32xf32, #tpu.memory_space<vmem>>, vector<2x32xf32>,
    } else {
    }
    %c0 = arith.constant 0 : index
    %c0_1 = arith.constant 0 : index
    %3 = vector.load %arg2[%c0, %c0_1] : memref<32x128xf32, #tpu.memory_space<vmem>>, vector<32x128xf32>
    %c0_2 = arith.constant 0 : index
    %c0_3 = arith.constant 0 : index
    %4 = vector.load %arg4[%c0_2, %c0_3] : memref<2x32xf32, #tpu.memory_space<vmem>>, vector<2x32xf32>
    %c0_4 = arith.constant 0 : index
    %c0_5 = arith.constant 0 : index
    %5 = vector.load %arg5[%c0_4, %c0_5] : memref<2x32xf32, #tpu.memory_space<vmem>>, vector<2x32xf32>
    %c0_i32_6 = arith.constant 0 : i32
    %6 = arith.index_cast %c0_i32_6 : i32 to index
    %c0_7 = arith.constant 0 : index
    %c0_8 = arith.constant 0 : index
    %7 = vector.load %arg1[%6, %c0_7, %c0_8] : memref<8x2x128xf32, #tpu.memory_space<vmem>>, vector<1x2x128xf32>
    %8 = vector.shape_cast %7 : vector<1x2x128xf32> to vector<2x128xf32>
    %cst = arith.constant dense<0.000000e+00> : vector<2x128xf32>
    %9 = tpu.matmul %4, %3, %cst {dimension_numbers = #tpu.dot_dimension_numbers<[1], [0], [0], [1], [0, 0, 1, 1], [], []>} : vector<2x32xf32>, vector<32x128xf32>, vector<2x128xf32> -> vector<2x128xf32>
    %10 = arith.addf %8, %9 : vector<2x128xf32>
    %11 = vector.extract_strided_slice %10 {offsets = [0, 0], sizes = [2, 96], strides = [1, 1]} : vector<2x128xf32> to vector<2x96xf32>
    %12 = arith.negf %11 : vector<2x96xf32>
    %13 = math.exp %12 : vector<2x96xf32>
    %cst_9 = arith.constant 1.000000e+00 : f32
    %14 = vector.broadcast %cst_9 : f32 to vector<2x96xf32>
    %15 = arith.addf %14, %13 : vector<2x96xf32>
    %16 = arith.divf %14, %15 : vector<2x96xf32>
    %17 = vector.extract_strided_slice %10 {offsets = [0, 96], sizes = [2, 32], strides = [1, 1]} : vector<2x128xf32> to vector<2x32xf32>
    %18 = math.tanh %17 : vector<2x32xf32>
    %19 = vector.extract_strided_slice %16 {offsets = [0, 0], sizes = [2, 32], strides = [1, 1]} : vector<2x96xf32> to vector<2x32xf32>
    %20 = vector.extract_strided_slice %16 {offsets = [0, 32], sizes = [2, 32], strides = [1, 1]} : vector<2x96xf32> to vector<2x32xf32>
    %21 = vector.extract_strided_slice %16 {offsets = [0, 64], sizes = [2, 32], strides = [1, 1]} : vector<2x96xf32> to vector<2x32xf32>
    %22 = arith.mulf %20, %5 : vector<2x32xf32>
    %23 = arith.mulf %19, %18 : vector<2x32xf32>
    %24 = arith.addf %22, %23 : vector<2x32xf32>
    %25 = math.tanh %24 : vector<2x32xf32>
    %26 = arith.mulf %21, %25 : vector<2x32xf32>
    %27 = arith.index_cast %c0_i32_6 : i32 to index
    %c0_10 = arith.constant 0 : index
    %c0_11 = arith.constant 0 : index
    %28 = vector.load %arg3[%27, %c0_10, %c0_11] : memref<8x2x32xf32, #tpu.memory_space<vmem>>, vector<1x2x32xf32>
    %29 = vector.shape_cast %28 : vector<1x2x32xf32> to vector<2x32xf32>
    %30 = vector.shape_cast %26 : vector<2x32xf32> to vector<1x2x32xf32>
    tpu.vector_store %arg3[%27, %c0_10, %c0_11], %30 {strides = array<i32>} : memref<8x2x32xf32, #tpu.memory_space<vmem>>, vector<1x2x32xf32>,
    %c1_i32 = arith.constant 1 : i32
    %31 = arith.index_cast %c1_i32 : i32 to index
    %c0_12 = arith.constant 0 : index
    %c0_13 = arith.constant 0 : index
    %32 = vector.load %arg1[%31, %c0_12, %c0_13] : memref<8x2x128xf32, #tpu.memory_space<vmem>>, vector<1x2x128xf32>
    %33 = vector.shape_cast %32 : vector<1x2x128xf32> to vector<2x128xf32>
    %cst_14 = arith.constant dense<0.000000e+00> : vector<2x128xf32>
    %34 = tpu.matmul %26, %3, %cst_14 {dimension_numbers = #tpu.dot_dimension_numbers<[1], [0], [0], [1], [0, 0, 1, 1], [], []>} : vector<2x32xf32>, vector<32x128xf32>, vector<2x128xf32> -> vector<2x128xf32>
    %35 = arith.addf %33, %34 : vector<2x128xf32>
    %36 = vector.extract_strided_slice %35 {offsets = [0, 0], sizes = [2, 96], strides = [1, 1]} : vector<2x128xf32> to vector<2x96xf32>
    %37 = arith.negf %36 : vector<2x96xf32>
    %38 = math.exp %37 : vector<2x96xf32>
    %cst_15 = arith.constant 1.000000e+00 : f32
    %39 = vector.broadcast %cst_15 : f32 to vector<2x96xf32>
    %40 = arith.addf %39, %38 : vector<2x96xf32>
    %41 = arith.divf %39, %40 : vector<2x96xf32>
    %42 = vector.extract_strided_slice %35 {offsets = [0, 96], sizes = [2, 32], strides = [1, 1]} : vector<2x128xf32> to vector<2x32xf32>
    %43 = math.tanh %42 : vector<2x32xf32>
    %44 = vector.extract_strided_slice %41 {offsets = [0, 0], sizes = [2, 32], strides = [1, 1]} : vector<2x96xf32> to vector<2x32xf32>
    %45 = vector.extract_strided_slice %41 {offsets = [0, 32], sizes = [2, 32], strides = [1, 1]} : vector<2x96xf32> to vector<2x32xf32>
    %46 = vector.extract_strided_slice %41 {offsets = [0, 64], sizes = [2, 32], strides = [1, 1]} : vector<2x96xf32> to vector<2x32xf32>
    %47 = arith.mulf %45, %24 : vector<2x32xf32>
    %48 = arith.mulf %44, %43 : vector<2x32xf32>
    %49 = arith.addf %47, %48 : vector<2x32xf32>
    %50 = math.tanh %49 : vector<2x32xf32>
    %51 = arith.mulf %46, %50 : vector<2x32xf32>
    %52 = arith.index_cast %c1_i32 : i32 to index
    %c0_16 = arith.constant 0 : index
    %c0_17 = arith.constant 0 : index
    %53 = vector.load %arg3[%52, %c0_16, %c0_17] : memref<8x2x32xf32, #tpu.memory_space<vmem>>, vector<1x2x32xf32>
    %54 = vector.shape_cast %53 : vector<1x2x32xf32> to vector<2x32xf32>
    %55 = vector.shape_cast %51 : vector<2x32xf32> to vector<1x2x32xf32>
    tpu.vector_store %arg3[%52, %c0_16, %c0_17], %55 {strides = array<i32>} : memref<8x2x32xf32, #tpu.memory_space<vmem>>, vector<1x2x32xf32>,
    %c2_i32 = arith.constant 2 : i32
    %56 = arith.index_cast %c2_i32 : i32 to index
    %c0_18 = arith.constant 0 : index
    %c0_19 = arith.constant 0 : index
    %57 = vector.load %arg1[%56, %c0_18, %c0_19] : memref<8x2x128xf32, #tpu.memory_space<vmem>>, vector<1x2x128xf32>
    %58 = vector.shape_cast %57 : vector<1x2x128xf32> to vector<2x128xf32>
    %cst_20 = arith.constant dense<0.000000e+00> : vector<2x128xf32>
    %59 = tpu.matmul %51, %3, %cst_20 {dimension_numbers = #tpu.dot_dimension_numbers<[1], [0], [0], [1], [0, 0, 1, 1], [], []>} : vector<2x32xf32>, vector<32x128xf32>, vector<2x128xf32> -> vector<2x128xf32>
    %60 = arith.addf %58, %59 : vector<2x128xf32>
    %61 = vector.extract_strided_slice %60 {offsets = [0, 0], sizes = [2, 96], strides = [1, 1]} : vector<2x128xf32> to vector<2x96xf32>
    %62 = arith.negf %61 : vector<2x96xf32>
    %63 = math.exp %62 : vector<2x96xf32>
    %cst_21 = arith.constant 1.000000e+00 : f32
    %64 = vector.broadcast %cst_21 : f32 to vector<2x96xf32>
    %65 = arith.addf %64, %63 : vector<2x96xf32>
    %66 = arith.divf %64, %65 : vector<2x96xf32>
    %67 = vector.extract_strided_slice %60 {offsets = [0, 96], sizes = [2, 32], strides = [1, 1]} : vector<2x128xf32> to vector<2x32xf32>
    %68 = math.tanh %67 : vector<2x32xf32>
    %69 = vector.extract_strided_slice %66 {offsets = [0, 0], sizes = [2, 32], strides = [1, 1]} : vector<2x96xf32> to vector<2x32xf32>
    %70 = vector.extract_strided_slice %66 {offsets = [0, 32], sizes = [2, 32], strides = [1, 1]} : vector<2x96xf32> to vector<2x32xf32>
    %71 = vector.extract_strided_slice %66 {offsets = [0, 64], sizes = [2, 32], strides = [1, 1]} : vector<2x96xf32> to vector<2x32xf32>
    %72 = arith.mulf %70, %49 : vector<2x32xf32>
    %73 = arith.mulf %69, %68 : vector<2x32xf32>
    %74 = arith.addf %72, %73 : vector<2x32xf32>
    %75 = math.tanh %74 : vector<2x32xf32>
    %76 = arith.mulf %71, %75 : vector<2x32xf32>
    %77 = arith.index_cast %c2_i32 : i32 to index
    %c0_22 = arith.constant 0 : index
    %c0_23 = arith.constant 0 : index
    %78 = vector.load %arg3[%77, %c0_22, %c0_23] : memref<8x2x32xf32, #tpu.memory_space<vmem>>, vector<1x2x32xf32>
    %79 = vector.shape_cast %78 : vector<1x2x32xf32> to vector<2x32xf32>
    %80 = vector.shape_cast %76 : vector<2x32xf32> to vector<1x2x32xf32>
    tpu.vector_store %arg3[%77, %c0_22, %c0_23], %80 {strides = array<i32>} : memref<8x2x32xf32, #tpu.memory_space<vmem>>, vector<1x2x32xf32>,
    %c3_i32 = arith.constant 3 : i32
    %81 = arith.index_cast %c3_i32 : i32 to index
    %c0_24 = arith.constant 0 : index
    %c0_25 = arith.constant 0 : index
    %82 = vector.load %arg1[%81, %c0_24, %c0_25] : memref<8x2x128xf32, #tpu.memory_space<vmem>>, vector<1x2x128xf32>
    %83 = vector.shape_cast %82 : vector<1x2x128xf32> to vector<2x128xf32>
    %cst_26 = arith.constant dense<0.000000e+00> : vector<2x128xf32>
    %84 = tpu.matmul %76, %3, %cst_26 {dimension_numbers = #tpu.dot_dimension_numbers<[1], [0], [0], [1], [0, 0, 1, 1], [], []>} : vector<2x32xf32>, vector<32x128xf32>, vector<2x128xf32> -> vector<2x128xf32>
    %85 = arith.addf %83, %84 : vector<2x128xf32>
    %86 = vector.extract_strided_slice %85 {offsets = [0, 0], sizes = [2, 96], strides = [1, 1]} : vector<2x128xf32> to vector<2x96xf32>
    %87 = arith.negf %86 : vector<2x96xf32>
    %88 = math.exp %87 : vector<2x96xf32>
    %cst_27 = arith.constant 1.000000e+00 : f32
    %89 = vector.broadcast %cst_27 : f32 to vector<2x96xf32>
    %90 = arith.addf %89, %88 : vector<2x96xf32>
    %91 = arith.divf %89, %90 : vector<2x96xf32>
    %92 = vector.extract_strided_slice %85 {offsets = [0, 96], sizes = [2, 32], strides = [1, 1]} : vector<2x128xf32> to vector<2x32xf32>
    %93 = math.tanh %92 : vector<2x32xf32>
    %94 = vector.extract_strided_slice %91 {offsets = [0, 0], sizes = [2, 32], strides = [1, 1]} : vector<2x96xf32> to vector<2x32xf32>
    %95 = vector.extract_strided_slice %91 {offsets = [0, 32], sizes = [2, 32], strides = [1, 1]} : vector<2x96xf32> to vector<2x32xf32>
    %96 = vector.extract_strided_slice %91 {offsets = [0, 64], sizes = [2, 32], strides = [1, 1]} : vector<2x96xf32> to vector<2x32xf32>
    %97 = arith.mulf %95, %74 : vector<2x32xf32>
    %98 = arith.mulf %94, %93 : vector<2x32xf32>
    %99 = arith.addf %97, %98 : vector<2x32xf32>
    %100 = math.tanh %99 : vector<2x32xf32>
    %101 = arith.mulf %96, %100 : vector<2x32xf32>
    %102 = arith.index_cast %c3_i32 : i32 to index
    %c0_28 = arith.constant 0 : index
    %c0_29 = arith.constant 0 : index
    %103 = vector.load %arg3[%102, %c0_28, %c0_29] : memref<8x2x32xf32, #tpu.memory_space<vmem>>, vector<1x2x32xf32>
    %104 = vector.shape_cast %103 : vector<1x2x32xf32> to vector<2x32xf32>
    %105 = vector.shape_cast %101 : vector<2x32xf32> to vector<1x2x32xf32>
    tpu.vector_store %arg3[%102, %c0_28, %c0_29], %105 {strides = array<i32>} : memref<8x2x32xf32, #tpu.memory_space<vmem>>, vector<1x2x32xf32>,
    %c4_i32 = arith.constant 4 : i32
    %106 = arith.index_cast %c4_i32 : i32 to index
    %c0_30 = arith.constant 0 : index
    %c0_31 = arith.constant 0 : index
    %107 = vector.load %arg1[%106, %c0_30, %c0_31] : memref<8x2x128xf32, #tpu.memory_space<vmem>>, vector<1x2x128xf32>
    %108 = vector.shape_cast %107 : vector<1x2x128xf32> to vector<2x128xf32>
    %cst_32 = arith.constant dense<0.000000e+00> : vector<2x128xf32>
    %109 = tpu.matmul %101, %3, %cst_32 {dimension_numbers = #tpu.dot_dimension_numbers<[1], [0], [0], [1], [0, 0, 1, 1], [], []>} : vector<2x32xf32>, vector<32x128xf32>, vector<2x128xf32> -> vector<2x128xf32>
    %110 = arith.addf %108, %109 : vector<2x128xf32>
    %111 = vector.extract_strided_slice %110 {offsets = [0, 0], sizes = [2, 96], strides = [1, 1]} : vector<2x128xf32> to vector<2x96xf32>
    %112 = arith.negf %111 : vector<2x96xf32>
    %113 = math.exp %112 : vector<2x96xf32>
    %cst_33 = arith.constant 1.000000e+00 : f32
    %114 = vector.broadcast %cst_33 : f32 to vector<2x96xf32>
    %115 = arith.addf %114, %113 : vector<2x96xf32>
    %116 = arith.divf %114, %115 : vector<2x96xf32>
    %117 = vector.extract_strided_slice %110 {offsets = [0, 96], sizes = [2, 32], strides = [1, 1]} : vector<2x128xf32> to vector<2x32xf32>
    %118 = math.tanh %117 : vector<2x32xf32>
    %119 = vector.extract_strided_slice %116 {offsets = [0, 0], sizes = [2, 32], strides = [1, 1]} : vector<2x96xf32> to vector<2x32xf32>
    %120 = vector.extract_strided_slice %116 {offsets = [0, 32], sizes = [2, 32], strides = [1, 1]} : vector<2x96xf32> to vector<2x32xf32>
    %121 = vector.extract_strided_slice %116 {offsets = [0, 64], sizes = [2, 32], strides = [1, 1]} : vector<2x96xf32> to vector<2x32xf32>
    %122 = arith.mulf %120, %99 : vector<2x32xf32>
    %123 = arith.mulf %119, %118 : vector<2x32xf32>
    %124 = arith.addf %122, %123 : vector<2x32xf32>
    %125 = math.tanh %124 : vector<2x32xf32>
    %126 = arith.mulf %121, %125 : vector<2x32xf32>
    %127 = arith.index_cast %c4_i32 : i32 to index
    %c0_34 = arith.constant 0 : index
    %c0_35 = arith.constant 0 : index
    %128 = vector.load %arg3[%127, %c0_34, %c0_35] : memref<8x2x32xf32, #tpu.memory_space<vmem>>, vector<1x2x32xf32>
    %129 = vector.shape_cast %128 : vector<1x2x32xf32> to vector<2x32xf32>
    %130 = vector.shape_cast %126 : vector<2x32xf32> to vector<1x2x32xf32>
    tpu.vector_store %arg3[%127, %c0_34, %c0_35], %130 {strides = array<i32>} : memref<8x2x32xf32, #tpu.memory_space<vmem>>, vector<1x2x32xf32>,
    %c5_i32 = arith.constant 5 : i32
    %131 = arith.index_cast %c5_i32 : i32 to index
    %c0_36 = arith.constant 0 : index
    %c0_37 = arith.constant 0 : index
    %132 = vector.load %arg1[%131, %c0_36, %c0_37] : memref<8x2x128xf32, #tpu.memory_space<vmem>>, vector<1x2x128xf32>
    %133 = vector.shape_cast %132 : vector<1x2x128xf32> to vector<2x128xf32>
    %cst_38 = arith.constant dense<0.000000e+00> : vector<2x128xf32>
    %134 = tpu.matmul %126, %3, %cst_38 {dimension_numbers = #tpu.dot_dimension_numbers<[1], [0], [0], [1], [0, 0, 1, 1], [], []>} : vector<2x32xf32>, vector<32x128xf32>, vector<2x128xf32> -> vector<2x128xf32>
    %135 = arith.addf %133, %134 : vector<2x128xf32>
    %136 = vector.extract_strided_slice %135 {offsets = [0, 0], sizes = [2, 96], strides = [1, 1]} : vector<2x128xf32> to vector<2x96xf32>
    %137 = arith.negf %136 : vector<2x96xf32>
    %138 = math.exp %137 : vector<2x96xf32>
    %cst_39 = arith.constant 1.000000e+00 : f32
    %139 = vector.broadcast %cst_39 : f32 to vector<2x96xf32>
    %140 = arith.addf %139, %138 : vector<2x96xf32>
    %141 = arith.divf %139, %140 : vector<2x96xf32>
    %142 = vector.extract_strided_slice %135 {offsets = [0, 96], sizes = [2, 32], strides = [1, 1]} : vector<2x128xf32> to vector<2x32xf32>
    %143 = math.tanh %142 : vector<2x32xf32>
    %144 = vector.extract_strided_slice %141 {offsets = [0, 0], sizes = [2, 32], strides = [1, 1]} : vector<2x96xf32> to vector<2x32xf32>
    %145 = vector.extract_strided_slice %141 {offsets = [0, 32], sizes = [2, 32], strides = [1, 1]} : vector<2x96xf32> to vector<2x32xf32>
    %146 = vector.extract_strided_slice %141 {offsets = [0, 64], sizes = [2, 32], strides = [1, 1]} : vector<2x96xf32> to vector<2x32xf32>
    %147 = arith.mulf %145, %124 : vector<2x32xf32>
    %148 = arith.mulf %144, %143 : vector<2x32xf32>
    %149 = arith.addf %147, %148 : vector<2x32xf32>
    %150 = math.tanh %149 : vector<2x32xf32>
    %151 = arith.mulf %146, %150 : vector<2x32xf32>
    %152 = arith.index_cast %c5_i32 : i32 to index
    %c0_40 = arith.constant 0 : index
    %c0_41 = arith.constant 0 : index
    %153 = vector.load %arg3[%152, %c0_40, %c0_41] : memref<8x2x32xf32, #tpu.memory_space<vmem>>, vector<1x2x32xf32>
    %154 = vector.shape_cast %153 : vector<1x2x32xf32> to vector<2x32xf32>
    %155 = vector.shape_cast %151 : vector<2x32xf32> to vector<1x2x32xf32>
    tpu.vector_store %arg3[%152, %c0_40, %c0_41], %155 {strides = array<i32>} : memref<8x2x32xf32, #tpu.memory_space<vmem>>, vector<1x2x32xf32>,
    %c6_i32 = arith.constant 6 : i32
    %156 = arith.index_cast %c6_i32 : i32 to index
    %c0_42 = arith.constant 0 : index
    %c0_43 = arith.constant 0 : index
    %157 = vector.load %arg1[%156, %c0_42, %c0_43] : memref<8x2x128xf32, #tpu.memory_space<vmem>>, vector<1x2x128xf32>
    %158 = vector.shape_cast %157 : vector<1x2x128xf32> to vector<2x128xf32>
    %cst_44 = arith.constant dense<0.000000e+00> : vector<2x128xf32>
    %159 = tpu.matmul %151, %3, %cst_44 {dimension_numbers = #tpu.dot_dimension_numbers<[1], [0], [0], [1], [0, 0, 1, 1], [], []>} : vector<2x32xf32>, vector<32x128xf32>, vector<2x128xf32> -> vector<2x128xf32>
    %160 = arith.addf %158, %159 : vector<2x128xf32>
    %161 = vector.extract_strided_slice %160 {offsets = [0, 0], sizes = [2, 96], strides = [1, 1]} : vector<2x128xf32> to vector<2x96xf32>
    %162 = arith.negf %161 : vector<2x96xf32>
    %163 = math.exp %162 : vector<2x96xf32>
    %cst_45 = arith.constant 1.000000e+00 : f32
    %164 = vector.broadcast %cst_45 : f32 to vector<2x96xf32>
    %165 = arith.addf %164, %163 : vector<2x96xf32>
    %166 = arith.divf %164, %165 : vector<2x96xf32>
    %167 = vector.extract_strided_slice %160 {offsets = [0, 96], sizes = [2, 32], strides = [1, 1]} : vector<2x128xf32> to vector<2x32xf32>
    %168 = math.tanh %167 : vector<2x32xf32>
    %169 = vector.extract_strided_slice %166 {offsets = [0, 0], sizes = [2, 32], strides = [1, 1]} : vector<2x96xf32> to vector<2x32xf32>
    %170 = vector.extract_strided_slice %166 {offsets = [0, 32], sizes = [2, 32], strides = [1, 1]} : vector<2x96xf32> to vector<2x32xf32>
    %171 = vector.extract_strided_slice %166 {offsets = [0, 64], sizes = [2, 32], strides = [1, 1]} : vector<2x96xf32> to vector<2x32xf32>
    %172 = arith.mulf %170, %149 : vector<2x32xf32>
    %173 = arith.mulf %169, %168 : vector<2x32xf32>
    %174 = arith.addf %172, %173 : vector<2x32xf32>
    %175 = math.tanh %174 : vector<2x32xf32>
    %176 = arith.mulf %171, %175 : vector<2x32xf32>
    %177 = arith.index_cast %c6_i32 : i32 to index
    %c0_46 = arith.constant 0 : index
    %c0_47 = arith.constant 0 : index
    %178 = vector.load %arg3[%177, %c0_46, %c0_47] : memref<8x2x32xf32, #tpu.memory_space<vmem>>, vector<1x2x32xf32>
    %179 = vector.shape_cast %178 : vector<1x2x32xf32> to vector<2x32xf32>
    %180 = vector.shape_cast %176 : vector<2x32xf32> to vector<1x2x32xf32>
    tpu.vector_store %arg3[%177, %c0_46, %c0_47], %180 {strides = array<i32>} : memref<8x2x32xf32, #tpu.memory_space<vmem>>, vector<1x2x32xf32>,
    %c7_i32 = arith.constant 7 : i32
    %181 = arith.index_cast %c7_i32 : i32 to index
    %c0_48 = arith.constant 0 : index
    %c0_49 = arith.constant 0 : index
    %182 = vector.load %arg1[%181, %c0_48, %c0_49] : memref<8x2x128xf32, #tpu.memory_space<vmem>>, vector<1x2x128xf32>
    %183 = vector.shape_cast %182 : vector<1x2x128xf32> to vector<2x128xf32>
    %cst_50 = arith.constant dense<0.000000e+00> : vector<2x128xf32>
    %184 = tpu.matmul %176, %3, %cst_50 {dimension_numbers = #tpu.dot_dimension_numbers<[1], [0], [0], [1], [0, 0, 1, 1], [], []>} : vector<2x32xf32>, vector<32x128xf32>, vector<2x128xf32> -> vector<2x128xf32>
    %185 = arith.addf %183, %184 : vector<2x128xf32>
    %186 = vector.extract_strided_slice %185 {offsets = [0, 0], sizes = [2, 96], strides = [1, 1]} : vector<2x128xf32> to vector<2x96xf32>
    %187 = arith.negf %186 : vector<2x96xf32>
    %188 = math.exp %187 : vector<2x96xf32>
    %cst_51 = arith.constant 1.000000e+00 : f32
    %189 = vector.broadcast %cst_51 : f32 to vector<2x96xf32>
    %190 = arith.addf %189, %188 : vector<2x96xf32>
    %191 = arith.divf %189, %190 : vector<2x96xf32>
    %192 = vector.extract_strided_slice %185 {offsets = [0, 96], sizes = [2, 32], strides = [1, 1]} : vector<2x128xf32> to vector<2x32xf32>
    %193 = math.tanh %192 : vector<2x32xf32>
    %194 = vector.extract_strided_slice %191 {offsets = [0, 0], sizes = [2, 32], strides = [1, 1]} : vector<2x96xf32> to vector<2x32xf32>
    %195 = vector.extract_strided_slice %191 {offsets = [0, 32], sizes = [2, 32], strides = [1, 1]} : vector<2x96xf32> to vector<2x32xf32>
    %196 = vector.extract_strided_slice %191 {offsets = [0, 64], sizes = [2, 32], strides = [1, 1]} : vector<2x96xf32> to vector<2x32xf32>
    %197 = arith.mulf %195, %174 : vector<2x32xf32>
    %198 = arith.mulf %194, %193 : vector<2x32xf32>
    %199 = arith.addf %197, %198 : vector<2x32xf32>
    %200 = math.tanh %199 : vector<2x32xf32>
    %201 = arith.mulf %196, %200 : vector<2x32xf32>
    %202 = arith.index_cast %c7_i32 : i32 to index
    %c0_52 = arith.constant 0 : index
    %c0_53 = arith.constant 0 : index
    %203 = vector.load %arg3[%202, %c0_52, %c0_53] : memref<8x2x32xf32, #tpu.memory_space<vmem>>, vector<1x2x32xf32>
    %204 = vector.shape_cast %203 : vector<1x2x32xf32> to vector<2x32xf32>
    %205 = vector.shape_cast %201 : vector<2x32xf32> to vector<1x2x32xf32>
    tpu.vector_store %arg3[%202, %c0_52, %c0_53], %205 {strides = array<i32>} : memref<8x2x32xf32, #tpu.memory_space<vmem>>, vector<1x2x32xf32>,
    %c8_i32 = arith.constant 8 : i32
    %c0_54 = arith.constant 0 : index
    %c0_55 = arith.constant 0 : index
    %206 = vector.load %arg4[%c0_54, %c0_55] : memref<2x32xf32, #tpu.memory_space<vmem>>, vector<2x32xf32>
    tpu.vector_store %arg4[%c0_54, %c0_55], %201 {strides = array<i32>} : memref<2x32xf32, #tpu.memory_space<vmem>>, vector<2x32xf32>,
    %c0_56 = arith.constant 0 : index
    %c0_57 = arith.constant 0 : index
    %207 = vector.load %arg5[%c0_56, %c0_57] : memref<2x32xf32, #tpu.memory_space<vmem>>, vector<2x32xf32>
    tpu.vector_store %arg5[%c0_56, %c0_57], %199 {strides = array<i32>} : memref<2x32xf32, #tpu.memory_space<vmem>>, vector<2x32xf32>,
    return
  }
  func.func @transform_0(%arg0: i32) -> (i32, i32, i32) {
    %c0_i32 = arith.constant 0 : i32
    %c0_i32_0 = arith.constant 0 : i32
    %c0_i32_1 = arith.constant 0 : i32
    return %arg0, %c0_i32, %c0_i32_0 : i32, i32, i32
  }
  func.func @transform_1(%arg0: i32) -> (i32, i32) {
    %c0_i32 = arith.constant 0 : i32
    %c0_i32_0 = arith.constant 0 : i32
    %c0_i32_1 = arith.constant 0 : i32
    return %c0_i32, %c0_i32_0 : i32, i32
  }
  func.func @transform_2(%arg0: i32) -> (i32, i32, i32) {
    %c0_i32 = arith.constant 0 : i32
    %c0_i32_0 = arith.constant 0 : i32
    %c0_i32_1 = arith.constant 0 : i32
    return %arg0, %c0_i32, %c0_i32_0 : i32, i32, i32
  }
}

</mosaic_0001>

<bundles_post_ra>
// kernel: tpu_custom_call.1
= control target key start
LH: loop header
LB: loop body
LE: loop exit
PB: predicated region body
PF: predicated region fallthrough
CT: control target
= control target key end

     0   :  { %7 = vsyncpa [#allocation5], 0  ;;  %s1438_s0 = inlined_call_operand.hbm [shape: f32[8,2,128], index: 0, kind: input, shape index: {}]   ;;  %s1439_s1 = inlined_call_operand.hbm [shape: f32[32,128], index: 1, kind: input, shape index: {}]   ;;  %s1440_s2 = inlined_call_operand.hbm [shape: f32[8,2,32], index: 2, kind: output, shape index: {}]  }
   0x1   :  { %8 = vsyncpa [#allocation8], 0 }
   0x2   :  { %9 = vsyncpa [#allocation6], 0  ;;  %s1262_s9 = smov [#allocation4]   ;;  %s1190_s13 = scalar_lea.hbm %s1438_s0, 256 }
   0x3   :  { %s15_s10 = sshll.u32 %s1262_s9, 4  ;;  %p1191_p0 = scmp.ne.s32.totalorder %s1438_s0, %s1190_s13  ;;  %s16_s10 = int_to_ptr.vmem [resolvable:$true] %s15_s10 }
   0x4   :  { %p1194_p1 = scmp.lt.u32.totalorder %s1190_s13, %s1438_s0 }
   0x6   :  { %p1196_p2 = pnand %p1194_p1, %p1191_p0 }
   0x8   :  { %1199 = shalt.err (!%p1196_p2)
}
   0x9   :  { %s1200_s18 = scalar_lea.vmem %s16_s10, 256  ;;  %p1205_p4 = scmp.lt.s32.totalorder %s16_s10, %s16_s10 }
   0xa   :  { %p1201_p3 = scmp.ne.s32.totalorder %s16_s10, %s1200_s18  ;;  %p1206_p5 = scmp.lt.s32.totalorder %s1200_s18, %s1200_s18 }
   0xc   :  { %p1207_p6 = por %p1206_p5, %p1205_p4 }
   0xe   :  { %p1208_p7 = pnand %p1207_p6, %p1201_p3 }
  0x10   :  { %1211 = shalt.err (!%p1208_p7)
}
  0x11   :  { %s1263_s19 = smov 32   ;;  %s1264_s20 = smov 2  }
  0x12   :  { %21 = dma.hbm_to_vmem [thread:$0]  %s1438_s0, 256, %s16_s10, [#allocation5], %s1263_s19, %s1263_s19, %s1264_s20  }
  0x13   :  { %s1265_s23 = smov [#allocation7]   ;;  %s1212_s27 = scalar_lea.hbm %s1439_s1, 512 }
  0x14   :  { %s27_s24 = sshll.u32 %s1265_s23, 4  ;;  %p1213_p8 = scmp.ne.s32.totalorder %s1439_s1, %s1212_s27  ;;  %s28_s24 = int_to_ptr.vmem [resolvable:$true] %s27_s24 }
  0x15   :  { %p1216_p9 = scmp.lt.u32.totalorder %s1212_s27, %s1439_s1 }
  0x17   :  { %p1218_p10 = pnand %p1216_p9, %p1213_p8 }
  0x19   :  { %1221 = shalt.err (!%p1218_p10)
}
  0x1a   :  { %s1222_s4 = scalar_lea.vmem %s28_s24, 512  ;;  %p1227_p12 = scmp.lt.s32.totalorder %s28_s24, %s28_s24 }
  0x1b   :  { %p1223_p11 = scmp.ne.s32.totalorder %s28_s24, %s1222_s4  ;;  %p1228_p13 = scmp.lt.s32.totalorder %s1222_s4, %s1222_s4 }
  0x1d   :  { %p1229_p0 = por %p1228_p13, %p1227_p12 }
  0x1f   :  { %p1230_p1 = pnand %p1229_p0, %p1223_p11 }
  0x21   :  { %1233 = shalt.err (!%p1230_p1)
}
  0x22   :  { %s1266_s0 = smov 128   ;;  %s1267_s5 = smov 8  }
  0x23   :  { %33 = dma.hbm_to_vmem [thread:$0]  %s1439_s1, 512, %s28_s24, [#allocation8], %s1266_s0, %s1266_s0, %s1267_s5  }
  0x24   :  { %1256 = dma.done.wait [#allocation5], 256  }
  0x25   :  { %1257 = vsyncadd [#allocation5], 4294967040 }
  0x26   :  { %1258 = dma.done.wait [#allocation8], 512  }
  0x27   :  { %1259 = vsyncadd [#allocation8], 4294966784  ;;  %vm44_vm0 = vcmask 254976   ;;  %v1268_v0 = vmov 0.0|0.0   ;;  %vm1269_vm1 = vmmov 0   ;;  %v1270_v1 = vmov 0.0  }
  0x28   :  { %1066 = vmatprep.subr.bf16.mxu0 %v1268_v0  ;;  %986 = vmatprep.mubr.msk.f32.mxu0 %vm1269_vm1, %v1270_v1  ;;  %45 = vst.msk [vmem:[#allocation2] sm:$0x3] %vm44_vm0, %v1270_v1  ;;  %46 = vst.msk [vmem:[#allocation3] sm:$0x3] %vm44_vm0, %v1270_v1  ;;  %v47_v2 = vld [vmem:[#allocation7] sm:$0xff]  ;;  %v48_v3 = vld [vmem:[#allocation7 + $0x8] sm:$0xff] }
  0x29   :  { %1072 = vmatprep.subr.bf16.mxu1 %v1268_v0  ;;  %997 = vmatprep.mubr.msk.f32.mxu1 %vm1269_vm1, %v1270_v1  ;;  %v49_v4 = vld [vmem:[#allocation7 + $0x10] sm:$0xff]  ;;  %v1326_v5 = vpack.c.bf16 %v48_v3, %v47_v2  ;;  %v50_v6 = vld [vmem:[#allocation7 + $0x18] sm:$0xff]  ;;  %vm54_vm2 = vcmask 261120   ;;  %s1271_s1 = smov 64   ;;  %s1272_s8 = smov 96  }
  0x2a   :  { %v1329_v7 = vpack.c.bf16 %v50_v6, %v49_v4  ;;  %v53_v9 = vld [vmem:[#allocation4] sm:$0x3]  ;;  %v164_v29 = vld [vmem:[#allocation4 + $0x2] sm:$0x3]  ;;  %v269_v47 = vld [vmem:[#allocation4 + $0x4] sm:$0x3] }
  0x2b   :  { %1068 = vmatpush3.bf16.msra.mxu0 %v1326_v5  ;;  %1074 = vmatpush3.bf16.msra.mxu1 %v1326_v5  ;;  %v374_v3 = vld [vmem:[#allocation4 + $0x6] sm:$0x3]  ;;  %s1273_s9 = smov [#allocation9]  }
  0x2c   :  { %1069 = vmatprep.subr.bf16.mxu0 %v1268_v0  ;;  %1075 = vmatprep.subr.bf16.mxu1 %v1268_v0  ;;  %s909_s10 = sshll.u32 %s1273_s9, 4  ;;  %s910_s10 = int_to_ptr.vmem [resolvable:$true] %s909_s10 }
  0x2d   :  { %s1234_s11 = scalar_lea.vmem %s910_s10, 256  ;;  %p1239_p3 = scmp.lt.s32.totalorder %s910_s10, %s910_s10 }
  0x2e   :  { %p1235_p2 = scmp.ne.s32.totalorder %s910_s10, %s1234_s11  ;;  %p1240_p4 = scmp.lt.s32.totalorder %s1234_s11, %s1234_s11 }
  0x2f   :  { %1071 = vmatpush3.bf16.msra.mxu0 %v1329_v7  ;;  %v51_v8 = vld [vmem:[#allocation2] sm:$0x3]  ;;  %1077 = vmatpush3.bf16.msra.mxu1 %v1329_v7  ;;  %v52_v14 = vld [vmem:[#allocation3] sm:$0x3] }
  0x30   :  { %1078 = vmatprep.subr.bf16.mxu0 %v1268_v0  ;;  %1084 = vmatprep.subr.bf16.mxu1 %v1268_v0  ;;  %p1241_p5 = por %p1240_p4, %p1239_p3 }
  0x32   :  { %987 = vmatmul.mubr.msk.f32.vlgmr.msra.gmra.mrb[0].mxu0 %vm54_vm2, %v51_v8  ;;  %p1242_p6 = pnand %p1241_p5, %p1235_p2 }
  0x33   :  { %1080 = vmatpush3.bf16.msra.mxu0 %v1326_v5  ;;  %1008 = vmatprep.mubr.msk.f32.mxu0 %vm1269_vm1, %v1270_v1 }
  0x34   :  { %1081 = vmatprep.subr.bf16.mxu0 %v1268_v0 }
  0x37   :  { %1083 = vmatpush3.bf16.msra.mxu0 %v1329_v7 }
  0x38   :  { %1090 = vmatprep.subr.bf16.mxu0 %v1268_v0 }
 0x105   :  { %v124_v10 = vpop.f32.mrb[0].mxu0 }
 0x106   :  { %v128_v11 = vadd.f32 %v124_v10, %v53_v9  ;;  %v988_v12 = vpop.f32.mrb[1].mxu0 }
 0x108   :  { %1126 = vtanh.f32 %v128_v11  ;;  %v923_v15 = vmul.f32 -1.442695, %v128_v11 }
 0x10a   :  { %1128 = vpow2.f32 %v923_v15 }
 0x112   :  { %v1127_v13 = vpop.eup %1126 }
 0x113   :  { %142 = vrot.lane.b32.xlu0 %v1127_v13, %s1263_s19 }
 0x114   :  { %v1129_v16 = vpop.eup %1128 }
 0x115   :  { %v132_v17 = vadd.f32 1.0, %v1129_v16 }
 0x117   :  { %137 = vrot.lane.b32.xlu0 %v52_v14, %s1263_s19  ;;  %1130 = vrcp.f32 %v132_v17 }
 0x121   :  { %v1131_v18 = vpop.eup %1130 }
 0x185   :  { %v143_v19 = vpop.permute.xlu0 %142 }
 0x186   :  { %v145_v20 = vmul.f32 %v1131_v18, %v143_v19 }
 0x188   :  { %147 = vrot.lane.b32.xlu1 %v145_v20, %s1263_s19 }
 0x189   :  { %v138_v21 = vpop.permute.xlu0 %137 }
 0x18a   :  { %v140_v22 = vmul.f32 %v1131_v18, %v138_v21 }
 0x1fa   :  { %v148_v23 = vpop.permute.xlu1 %147 }
 0x1fb   :  { %v150_v24 = vadd.f32 %v148_v23, %v140_v22  ;;  %v479_v23 = vld [vmem:[#allocation4 + $0x8] sm:$0x3] }
 0x1fd   :  { %1132 = vtanh.f32 %v150_v24 }
 0x207   :  { %v1133_v25 = vpop.eup %1132 }
 0x208   :  { %153 = vrot.lane.b32.xlu1 %v1133_v25, %s1263_s19 }
 0x27a   :  { %v154_v26 = vpop.permute.xlu1 %153 }
 0x27b   :  { %v156_v27 = vmul.f32 %v1131_v18, %v154_v26 }
 0x27d   :  { %158 = vrot.lane.b32.xlu0 %v156_v27, %s1271_s1 }
 0x2ef   :  { %v159_v28 = vpop.permute.xlu0 %158 }
 0x2f0   :  { %162 = vst.msk [vmem:[#allocation9] sm:$0x3] %vm44_vm0, %v159_v28  ;;  %998 = vmatmul.mubr.msk.f32.vlgmr.msra.gmra.mrb[0].mxu1 %vm54_vm2, %v159_v28 }
 0x2f1   :  { %1086 = vmatpush3.bf16.msra.mxu1 %v1326_v5  ;;  %1019 = vmatprep.mubr.msk.f32.mxu1 %vm1269_vm1, %v1270_v1 }
 0x2f2   :  { %1087 = vmatprep.subr.bf16.mxu1 %v1268_v0 }
 0x2f5   :  { %1089 = vmatpush3.bf16.msra.mxu1 %v1329_v7 }
 0x2f6   :  { %1096 = vmatprep.subr.bf16.mxu1 %v1268_v0 }
 0x3c3   :  { %v233_v30 = vpop.f32.mrb[0].mxu1 }
 0x3c4   :  { %v237_v31 = vadd.f32 %v233_v30, %v164_v29  ;;  %v999_v32 = vpop.f32.mrb[1].mxu1 }
 0x3c6   :  { %1134 = vtanh.f32 %v237_v31  ;;  %v925_v34 = vmul.f32 -1.442695, %v237_v31 }
 0x3c8   :  { %1136 = vpow2.f32 %v925_v34 }
 0x3d0   :  { %v1135_v33 = vpop.eup %1134 }
 0x3d1   :  { %247 = vrot.lane.b32.xlu1 %v1135_v33, %s1263_s19 }
 0x3d2   :  { %v1137_v35 = vpop.eup %1136 }
 0x3d3   :  { %v241_v36 = vadd.f32 1.0, %v1137_v35 }
 0x3d5   :  { %1138 = vrcp.f32 %v241_v36 }
 0x3df   :  { %v1139_v37 = vpop.eup %1138 }
 0x3e0   :  { %v245_v40 = vmul.f32 %v1139_v37, %v150_v24 }
 0x443   :  { %v248_v38 = vpop.permute.xlu1 %247 }
 0x444   :  { %v250_v39 = vmul.f32 %v1139_v37, %v248_v38 }
 0x446   :  { %252 = vrot.lane.b32.xlu0 %v250_v39, %s1263_s19 }
 0x4b8   :  { %v253_v41 = vpop.permute.xlu0 %252 }
 0x4b9   :  { %v255_v42 = vadd.f32 %v253_v41, %v245_v40  ;;  %v584_v41 = vld [vmem:[#allocation4 + $0xa] sm:$0x3] }
 0x4bb   :  { %1140 = vtanh.f32 %v255_v42 }
 0x4c5   :  { %v1141_v43 = vpop.eup %1140 }
 0x4c6   :  { %258 = vrot.lane.b32.xlu1 %v1141_v43, %s1263_s19 }
 0x538   :  { %v259_v44 = vpop.permute.xlu1 %258 }
 0x539   :  { %v261_v45 = vmul.f32 %v1139_v37, %v259_v44 }
 0x53b   :  { %263 = vrot.lane.b32.xlu0 %v261_v45, %s1271_s1 }
 0x5ad   :  { %v264_v46 = vpop.permute.xlu0 %263 }
 0x5ae   :  { %267 = vst.msk [vmem:[#allocation9 + $0x2] sm:$0x3] %vm44_vm0, %v264_v46  ;;  %1009 = vmatmul.mubr.msk.f32.vlgmr.msra.gmra.mrb[2].mxu0 %vm54_vm2, %v264_v46 }
 0x5af   :  { %1092 = vmatpush3.bf16.msra.mxu0 %v1326_v5  ;;  %1030 = vmatprep.mubr.msk.f32.mxu0 %vm1269_vm1, %v1270_v1 }
 0x5b0   :  { %1093 = vmatprep.subr.bf16.mxu0 %v1268_v0 }
 0x5b3   :  { %1095 = vmatpush3.bf16.msra.mxu0 %v1329_v7 }
 0x5b4   :  { %1102 = vmatprep.subr.bf16.mxu0 %v1268_v0 }
 0x681   :  { %v338_v48 = vpop.f32.mrb[2].mxu0 }
 0x682   :  { %v342_v49 = vadd.f32 %v338_v48, %v269_v47  ;;  %v1010_v50 = vpop.f32.mrb[3].mxu0 }
 0x684   :  { %1142 = vtanh.f32 %v342_v49  ;;  %v927_v52 = vmul.f32 -1.442695, %v342_v49 }
 0x686   :  { %1144 = vpow2.f32 %v927_v52 }
 0x68e   :  { %v1143_v51 = vpop.eup %1142 }
 0x68f   :  { %352 = vrot.lane.b32.xlu1 %v1143_v51, %s1263_s19 }
 0x690   :  { %v1145_v53 = vpop.eup %1144 }
 0x691   :  { %v346_v54 = vadd.f32 1.0, %v1145_v53 }
 0x693   :  { %1146 = vrcp.f32 %v346_v54 }
 0x69d   :  { %v1147_v55 = vpop.eup %1146 }
 0x69e   :  { %v350_v58 = vmul.f32 %v1147_v55, %v255_v42 }
 0x701   :  { %v353_v56 = vpop.permute.xlu1 %352 }
 0x702   :  { %v355_v57 = vmul.f32 %v1147_v55, %v353_v56 }
 0x704   :  { %357 = vrot.lane.b32.xlu0 %v355_v57, %s1263_s19 }
 0x776   :  { %v358_v59 = vpop.permute.xlu0 %357 }
 0x777   :  { %v360_v60 = vadd.f32 %v358_v59, %v350_v58 }
 0x779   :  { %1148 = vtanh.f32 %v360_v60 }
 0x783   :  { %v1149_v61 = vpop.eup %1148 }
 0x784   :  { %363 = vrot.lane.b32.xlu1 %v1149_v61, %s1263_s19 }
 0x7f6   :  { %v364_v62 = vpop.permute.xlu1 %363 }
 0x7f7   :  { %v366_v63 = vmul.f32 %v1147_v55, %v364_v62  ;;  %v689_v55 = vld [vmem:[#allocation4 + $0xc] sm:$0x3] }
 0x7f9   :  { %368 = vrot.lane.b32.xlu0 %v366_v63, %s1271_s1 }
 0x86b   :  { %v369_v2 = vpop.permute.xlu0 %368 }
 0x86c   :  { %372 = vst.msk [vmem:[#allocation9 + $0x4] sm:$0x3] %vm44_vm0, %v369_v2  ;;  %1020 = vmatmul.mubr.msk.f32.vlgmr.msra.gmra.mrb[2].mxu1 %vm54_vm2, %v369_v2 }
 0x86d   :  { %1098 = vmatpush3.bf16.msra.mxu1 %v1326_v5  ;;  %1041 = vmatprep.mubr.msk.f32.mxu1 %vm1269_vm1, %v1270_v1 }
 0x86e   :  { %1099 = vmatprep.subr.bf16.mxu1 %v1268_v0 }
 0x871   :  { %1101 = vmatpush3.bf16.msra.mxu1 %v1329_v7 }
 0x872   :  { %1108 = vmatprep.subr.bf16.mxu1 %v1268_v0 }
 0x93f   :  { %v443_v4 = vpop.f32.mrb[2].mxu1 }
 0x940   :  { %v447_v6 = vadd.f32 %v443_v4, %v374_v3  ;;  %v1021_v8 = vpop.f32.mrb[3].mxu1 }
 0x942   :  { %1150 = vtanh.f32 %v447_v6  ;;  %v929_v10 = vmul.f32 -1.442695, %v447_v6 }
 0x944   :  { %1152 = vpow2.f32 %v929_v10 }
 0x94c   :  { %v1151_v9 = vpop.eup %1150 }
 0x94d   :  { %457 = vrot.lane.b32.xlu1 %v1151_v9, %s1263_s19 }
 0x94e   :  { %v1153_v11 = vpop.eup %1152 }
 0x94f   :  { %v451_v12 = vadd.f32 1.0, %v1153_v11 }
 0x951   :  { %1154 = vrcp.f32 %v451_v12 }
 0x95b   :  { %v1155_v13 = vpop.eup %1154 }
 0x95c   :  { %v455_v16 = vmul.f32 %v1155_v13, %v360_v60 }
 0x9bf   :  { %v458_v14 = vpop.permute.xlu1 %457 }
 0x9c0   :  { %v460_v15 = vmul.f32 %v1155_v13, %v458_v14 }
 0x9c2   :  { %462 = vrot.lane.b32.xlu0 %v460_v15, %s1263_s19 }
 0xa34   :  { %v463_v17 = vpop.permute.xlu0 %462 }
 0xa35   :  { %v465_v18 = vadd.f32 %v463_v17, %v455_v16 }
 0xa37   :  { %1156 = vtanh.f32 %v465_v18 }
 0xa41   :  { %v1157_v19 = vpop.eup %1156 }
 0xa42   :  { %468 = vrot.lane.b32.xlu1 %v1157_v19, %s1263_s19 }
 0xab4   :  { %v469_v20 = vpop.permute.xlu1 %468 }
 0xab5   :  { %v471_v21 = vmul.f32 %v1155_v13, %v469_v20  ;;  %v794_v13 = vld [vmem:[#allocation4 + $0xe] sm:$0x3] }
 0xab7   :  { %473 = vrot.lane.b32.xlu0 %v471_v21, %s1271_s1 }
 0xb29   :  { %v474_v22 = vpop.permute.xlu0 %473 }
 0xb2a   :  { %477 = vst.msk [vmem:[#allocation9 + $0x6] sm:$0x3] %vm44_vm0, %v474_v22  ;;  %1031 = vmatmul.mubr.msk.f32.vlgmr.msra.gmra.mrb[4].mxu0 %vm54_vm2, %v474_v22 }
 0xb2b   :  { %1104 = vmatpush3.bf16.msra.mxu0 %v1326_v5  ;;  %1052 = vmatprep.mubr.msk.f32.mxu0 %vm1269_vm1, %v1270_v1 }
 0xb2c   :  { %1105 = vmatprep.subr.bf16.mxu0 %v1268_v0 }
 0xb2f   :  { %1107 = vmatpush3.bf16.msra.mxu0 %v1329_v7 }
 0xbfd   :  { %v548_v24 = vpop.f32.mrb[4].mxu0 }
 0xbfe   :  { %v552_v25 = vadd.f32 %v548_v24, %v479_v23  ;;  %v1032_v26 = vpop.f32.mrb[5].mxu0 }
 0xc00   :  { %1158 = vtanh.f32 %v552_v25  ;;  %v931_v28 = vmul.f32 -1.442695, %v552_v25 }
 0xc02   :  { %1160 = vpow2.f32 %v931_v28 }
 0xc0a   :  { %v1159_v27 = vpop.eup %1158 }
 0xc0b   :  { %562 = vrot.lane.b32.xlu1 %v1159_v27, %s1263_s19 }
 0xc0c   :  { %v1161_v29 = vpop.eup %1160 }
 0xc0d   :  { %v556_v30 = vadd.f32 1.0, %v1161_v29 }
 0xc0f   :  { %1162 = vrcp.f32 %v556_v30 }
 0xc19   :  { %v1163_v31 = vpop.eup %1162 }
 0xc1a   :  { %v560_v34 = vmul.f32 %v1163_v31, %v465_v18 }
 0xc7d   :  { %v563_v32 = vpop.permute.xlu1 %562 }
 0xc7e   :  { %v565_v33 = vmul.f32 %v1163_v31, %v563_v32 }
 0xc80   :  { %567 = vrot.lane.b32.xlu0 %v565_v33, %s1263_s19 }
 0xcf2   :  { %v568_v35 = vpop.permute.xlu0 %567 }
 0xcf3   :  { %v570_v36 = vadd.f32 %v568_v35, %v560_v34 }
 0xcf5   :  { %1164 = vtanh.f32 %v570_v36 }
 0xcff   :  { %v1165_v37 = vpop.eup %1164 }
 0xd00   :  { %573 = vrot.lane.b32.xlu1 %v1165_v37, %s1263_s19 }
 0xd72   :  { %v574_v38 = vpop.permute.xlu1 %573 }
 0xd73   :  { %v576_v39 = vmul.f32 %v1163_v31, %v574_v38 }
 0xd75   :  { %578 = vrot.lane.b32.xlu0 %v576_v39, %s1271_s1 }
 0xde7   :  { %v579_v40 = vpop.permute.xlu0 %578 }
 0xde8   :  { %582 = vst.msk [vmem:[#allocation9 + $0x8] sm:$0x3] %vm44_vm0, %v579_v40  ;;  %1042 = vmatmul.mubr.msk.f32.vlgmr.msra.gmra.mrb[4].mxu1 %vm54_vm2, %v579_v40 }
 0xde9   :  { %1110 = vmatpush3.bf16.msra.mxu1 %v1326_v5  ;;  %1063 = vmatprep.mubr.msk.f32.mxu1 %vm1269_vm1, %v1270_v1 }
 0xdea   :  { %1111 = vmatprep.subr.bf16.mxu1 %v1268_v0 }
 0xded   :  { %1113 = vmatpush3.bf16.msra.mxu1 %v1329_v7 }
 0xebb   :  { %v653_v42 = vpop.f32.mrb[4].mxu1 }
 0xebc   :  { %v657_v43 = vadd.f32 %v653_v42, %v584_v41  ;;  %v1043_v44 = vpop.f32.mrb[5].mxu1 }
 0xebe   :  { %1166 = vtanh.f32 %v657_v43  ;;  %v933_v46 = vmul.f32 -1.442695, %v657_v43 }
 0xec0   :  { %1168 = vpow2.f32 %v933_v46 }
 0xec8   :  { %v1167_v45 = vpop.eup %1166 }
 0xec9   :  { %667 = vrot.lane.b32.xlu1 %v1167_v45, %s1263_s19 }
 0xeca   :  { %v1169_v47 = vpop.eup %1168 }
 0xecb   :  { %v661_v48 = vadd.f32 1.0, %v1169_v47 }
 0xecd   :  { %1170 = vrcp.f32 %v661_v48 }
 0xed7   :  { %v1171_v5 = vpop.eup %1170 }
 0xed8   :  { %v665_v0 = vmul.f32 %v1171_v5, %v570_v36 }
 0xf3b   :  { %v668_v49 = vpop.permute.xlu1 %667 }
 0xf3c   :  { %v670_v1 = vmul.f32 %v1171_v5, %v668_v49 }
 0xf3e   :  { %672 = vrot.lane.b32.xlu0 %v670_v1, %s1263_s19 }
 0xfb0   :  { %v673_v7 = vpop.permute.xlu0 %672 }
 0xfb1   :  { %v675_v50 = vadd.f32 %v673_v7, %v665_v0 }
 0xfb3   :  { %1172 = vtanh.f32 %v675_v50 }
 0xfbd   :  { %v1173_v51 = vpop.eup %1172 }
 0xfbe   :  { %678 = vrot.lane.b32.xlu1 %v1173_v51, %s1263_s19 }
0x1030   :  { %v679_v52 = vpop.permute.xlu1 %678 }
0x1031   :  { %v681_v53 = vmul.f32 %v1171_v5, %v679_v52 }
0x1033   :  { %683 = vrot.lane.b32.xlu0 %v681_v53, %s1271_s1 }
0x10a5   :  { %v684_v54 = vpop.permute.xlu0 %683 }
0x10a6   :  { %687 = vst.msk [vmem:[#allocation9 + $0xa] sm:$0x3] %vm44_vm0, %v684_v54  ;;  %1053 = vmatmul.mubr.msk.f32.vlgmr.msra.gmra.mrb[6].mxu0 %vm54_vm2, %v684_v54 }
0x1179   :  { %v758_v56 = vpop.f32.mrb[6].mxu0 }
0x117a   :  { %v762_v57 = vadd.f32 %v758_v56, %v689_v55  ;;  %v1054_v58 = vpop.f32.mrb[7].mxu0 }
0x117c   :  { %1174 = vtanh.f32 %v762_v57  ;;  %v935_v60 = vmul.f32 -1.442695, %v762_v57 }
0x117e   :  { %1176 = vpow2.f32 %v935_v60 }
0x1186   :  { %v1175_v59 = vpop.eup %1174 }
0x1187   :  { %772 = vrot.lane.b32.xlu1 %v1175_v59, %s1263_s19 }
0x1188   :  { %v1177_v61 = vpop.eup %1176 }
0x1189   :  { %v766_v62 = vadd.f32 1.0, %v1177_v61 }
0x118b   :  { %1178 = vrcp.f32 %v766_v62 }
0x1195   :  { %v1179_v63 = vpop.eup %1178 }
0x1196   :  { %v770_v4 = vmul.f32 %v1179_v63, %v675_v50 }
0x11f9   :  { %v773_v2 = vpop.permute.xlu1 %772 }
0x11fa   :  { %v775_v3 = vmul.f32 %v1179_v63, %v773_v2 }
0x11fc   :  { %777 = vrot.lane.b32.xlu0 %v775_v3, %s1263_s19 }
0x126e   :  { %v778_v6 = vpop.permute.xlu0 %777 }
0x126f   :  { %v780_v8 = vadd.f32 %v778_v6, %v770_v4 }
0x1271   :  { %1180 = vtanh.f32 %v780_v8 }
0x127b   :  { %v1181_v9 = vpop.eup %1180 }
0x127c   :  { %783 = vrot.lane.b32.xlu1 %v1181_v9, %s1263_s19 }
0x12ee   :  { %v784_v10 = vpop.permute.xlu1 %783 }
0x12ef   :  { %v786_v11 = vmul.f32 %v1179_v63, %v784_v10 }
0x12f1   :  { %788 = vrot.lane.b32.xlu0 %v786_v11, %s1271_s1 }
0x1363   :  { %v789_v12 = vpop.permute.xlu0 %788 }
0x1364   :  { %792 = vst.msk [vmem:[#allocation9 + $0xc] sm:$0x3] %vm44_vm0, %v789_v12  ;;  %1064 = vmatmul.mubr.msk.f32.vlgmr.msra.gmra.mrb[6].mxu1 %vm54_vm2, %v789_v12 }
0x1437   :  { %v863_v14 = vpop.f32.mrb[6].mxu1 }
0x1438   :  { %v867_v15 = vadd.f32 %v863_v14, %v794_v13  ;;  %v1065_v16 = vpop.f32.mrb[7].mxu1 }
0x143a   :  { %1182 = vtanh.f32 %v867_v15  ;;  %v937_v18 = vmul.f32 -1.442695, %v867_v15 }
0x143c   :  { %1184 = vpow2.f32 %v937_v18 }
0x1444   :  { %v1183_v17 = vpop.eup %1182 }
0x1445   :  { %877 = vrot.lane.b32.xlu1 %v1183_v17, %s1263_s19 }
0x1446   :  { %v1185_v19 = vpop.eup %1184 }
0x1447   :  { %v871_v20 = vadd.f32 1.0, %v1185_v19 }
0x1449   :  { %1186 = vrcp.f32 %v871_v20 }
0x1453   :  { %v1187_v21 = vpop.eup %1186 }
0x1454   :  { %v875_v24 = vmul.f32 %v1187_v21, %v780_v8 }
0x14b7   :  { %v878_v22 = vpop.permute.xlu1 %877 }
0x14b8   :  { %v880_v23 = vmul.f32 %v1187_v21, %v878_v22 }
0x14ba   :  { %882 = vrot.lane.b32.xlu0 %v880_v23, %s1263_s19 }
0x152c   :  { %v883_v25 = vpop.permute.xlu0 %882 }
0x152d   :  { %v885_v26 = vadd.f32 %v883_v25, %v875_v24 }
0x152f   :  { %1188 = vtanh.f32 %v885_v26 }
0x1539   :  { %v1189_v27 = vpop.eup %1188 }
0x153a   :  { %888 = vrot.lane.b32.xlu1 %v1189_v27, %s1263_s19 }
0x153e   :  { %900 = vrot.lane.b32.xlu1 %v885_v26, %s1272_s8 }
0x15ac   :  { %v889_v28 = vpop.permute.xlu1 %888 }
0x15ad   :  { %v891_v29 = vmul.f32 %v1187_v21, %v889_v28 }
0x15af   :  { %893 = vrot.lane.b32.xlu0 %v891_v29, %s1271_s1 }
0x15b0   :  { %v901_v30 = vpop.permute.xlu1 %900 }
0x15b1   :  { %903 = vst.msk [vmem:[#allocation3] sm:$0x3] %vm44_vm0, %v901_v30 }
0x1621   :  { %v894_v31 = vpop.permute.xlu0 %893 }
0x1622   :  { %897 = vst.msk [vmem:[#allocation9 + $0xe] sm:$0x3] %vm44_vm0, %v894_v31  ;;  %898 = vst.msk [vmem:[#allocation2] sm:$0x3] %vm44_vm0, %v894_v31 }
0x1623   :  { %1245 = shalt.err (!%p1242_p6)
}
0x1624   :  { %s1246_s14 = scalar_lea.hbm %s1440_s2, 256 }
0x1625   :  { %p1247_p7 = scmp.ne.s32.totalorder %s1440_s2, %s1246_s14  ;;  %p1250_p8 = scmp.lt.u32.totalorder %s1246_s14, %s1440_s2 }
0x1627   :  { %p1252_p9 = pnand %p1250_p8, %p1247_p7 }
0x1629   :  { %1255 = shalt.err (!%p1252_p9)
}
0x162a   :  { %915 = dma.vmem_to_hbm [thread:$0]  %s910_s10, 256, %s1440_s2, [#allocation6], %s1263_s19, %s1263_s19, %s1264_s20  }
0x162b   :  { %1260 = dma.done.wait [#allocation6], 256  }
0x162c   :  { %1261 = vsyncadd [#allocation6], 4294967040 }
0x162d   :  { %919 = vsyncpa [#allocation5], 1 }
0x162e   :  { %920 = vsyncpa [#allocation8], 1 }
0x162f   :  { %921 = vsyncpa [#allocation6], 1 }

</bundles_post_ra>
